<compile_context>
chip_gen: v7x
topology: tpu7x:2x2x1
jax: 0.10.0
libtpu: 0.0.40
codegen_flags: <defaults>
</compile_context>

<pallas_src>
import functools

import jax
import jax.numpy as jnp
from jax.experimental import pallas as pl
from jax.experimental.pallas import tpu as pltpu


# ----------------------------------------------------------------------------
# Kernel
# ----------------------------------------------------------------------------
def _make_h_swish_kernel(compute_dtype):
    def kernel(x_ref, o_ref):
        x = x_ref[...].astype(compute_dtype)
        # relu6(x + 3) / 6  ==  clamp(x + 3, 0, 6) * (1/6)
        hs = jnp.clip(x + 3.0, 0.0, 6.0) * (1.0 / 6.0)
        o_ref[...] = (x * hs).astype(o_ref.dtype)

    return kernel


def _h_swish_jnp(x):
    """Plain-XLA hard-swish for tiny ragged tails (< 128 elements)."""
    xf = x.astype(jnp.float32)
    return (xf * jnp.clip(xf + 3.0, 0.0, 6.0) * (1.0 / 6.0)).astype(x.dtype)


# ----------------------------------------------------------------------------
# Chip-aware configuration
# ----------------------------------------------------------------------------
@functools.lru_cache(maxsize=1)
def _chip_config():
    kind = ""
    try:
        kind = jax.devices()[0].device_kind.lower()
    except Exception:
        pass
    if "v7" in kind:
        # ~3.2 TB/s HBM but only 64 MiB physical VMEM (32 MiB scoped default):
        # 8 MiB blocks halve per-step overhead; 4 x 8 MiB pipeline buffers need
        # an explicit vmem raise.
        return dict(block_bytes=8 << 20, vmem_limit=48 << 20, f32_only_vpu=False)
    if "v5" in kind:
        # v5e: 16 MiB scoped-VMEM default is exactly the 4 x 4 MiB working set,
        # so raise the limit explicitly (physical VMEM = 128 MiB). No bf16 VALU.
        return dict(block_bytes=4 << 20, vmem_limit=64 << 20, f32_only_vpu=True)
    # v6e (and unknown): measured knee is ~4 MiB blocks (85-86% of HBM roofline).
    return dict(block_bytes=4 << 20, vmem_limit=64 << 20, f32_only_vpu=False)


def _pick_row_tile(rows, lanes, itemsize, target_block_bytes):
    """Row-tile + grid length for a (rows, lanes) slab.

    Targets ~target_block_bytes per block, keeps the sublane dim a multiple of
    the dtype packing granularity, and prefers an EVEN block count split into
    near-equal halves so v7x's two TensorCores stream balanced work (neutral
    on single-TC v5e/v6e).
    """
    mult = max(8, 32 // itemsize)  # 8 (f32) / 16 (bf16) / 32 (int8) sublanes
    if rows < 2 * mult:
        return rows, 1             # tiny input: one full-array block
    bytes_per_row = lanes * itemsize
    cap = max(mult, (min(rows, target_block_bytes // bytes_per_row) // mult) * mult)
    nblocks = pl.cdiv(rows, cap)
    if nblocks % 2 == 1:           # avoid odd counts (e.g. 1 or 3): 2-TC balance
        nblocks += 1
    tr = pl.cdiv(pl.cdiv(rows, nblocks), mult) * mult
    return tr, pl.cdiv(rows, tr)


# ----------------------------------------------------------------------------
# pallas_call wrapper
# ----------------------------------------------------------------------------
def _h_swish_2d(x2d, compute_dtype, tr, grid_r, lanes, vmem_limit, donate):
    rows = x2d.shape[0]
    n = x2d.size
    itemsize = x2d.dtype.itemsize
    return pl.pallas_call(
        _make_h_swish_kernel(compute_dtype),
        out_shape=jax.ShapeDtypeStruct((rows, lanes), x2d.dtype),
        grid_spec=pltpu.PrefetchScalarGridSpec(
            num_scalar_prefetch=0,
            grid=(grid_r,),
            in_specs=[pl.BlockSpec((tr, lanes), lambda i: (i, 0))],
            out_specs=pl.BlockSpec((tr, lanes), lambda i: (i, 0)),
        ),
        compiler_params=pltpu.CompilerParams(
            dimension_semantics=("parallel",),
            vmem_limit_bytes=vmem_limit,
        ),
        cost_estimate=pl.CostEstimate(
            flops=5 * n, transcendentals=0, bytes_accessed=2 * n * itemsize
        ),
        input_output_aliases=({0: 0} if donate else {}),
    )(x2d)


def h_swish(x: jax.Array, *, target_block_bytes: int | None = None,
            donate: bool = False) -> jax.Array:
    """Elementwise hard-swish. Accepts any shape; returns same shape/dtype."""
    orig_shape = x.shape
    orig_dtype = x.dtype
    n = x.size
    if n == 0:
        return x

    cfg = _chip_config()
    if target_block_bytes is None:
        target_block_bytes = cfg["block_bytes"]

    # Compute dtype: bf16 stays bf16 on v6e/v7x (bf16 VALU, half the vreg
    # pressure, no pack/unpack casts); v5e (no bf16 VALU) and all other dtypes
    # compute in f32.
    if orig_dtype == jnp.float32:
        compute_dtype = jnp.float32
    elif orig_dtype == jnp.bfloat16 and not cfg["f32_only_vpu"]:
        compute_dtype = jnp.bfloat16
    else:
        compute_dtype = jnp.float32

    itemsize = jnp.dtype(orig_dtype).itemsize
    x_flat = x.reshape(-1)

    # Widest lane dim that divides n exactly -> no pad, no slice, unmasked vst.
    lanes = next((c for c in (1024, 512, 256, 128) if n % c == 0), None)

    if lanes is not None:
        rows = n // lanes
        tr, grid_r = _pick_row_tile(rows, lanes, itemsize, target_block_bytes)
        out2d = _h_swish_2d(x_flat.reshape(rows, lanes), compute_dtype,
                            tr, grid_r, lanes, cfg["vmem_limit"], donate)
        return out2d.reshape(orig_shape)

    # Ragged size: kernel over the largest multiple-of-128 prefix, plain jnp for
    # the (<128-element) tail. Avoids the full-tensor jnp.pad and final [:n]
    # slice of the old fallback.
    lanes = 128
    n_main = (n // lanes) * lanes
    if n_main == 0:
        return _h_swish_jnp(x_flat).reshape(orig_shape)

    rows = n_main // lanes
    tr, grid_r = _pick_row_tile(rows, lanes, itemsize, target_block_bytes)
    main = _h_swish_2d(x_flat[:n_main].reshape(rows, lanes), compute_dtype,
                       tr, grid_r, lanes, cfg["vmem_limit"], donate=False)
    tail = _h_swish_jnp(x_flat[n_main:])
    return jnp.concatenate([main.reshape(-1), tail]).reshape(orig_shape)


# ----------------------------------------------------------------------------
# Reference + tests
# ----------------------------------------------------------------------------
def _h_swish_ref(x):
    return x * jnp.clip(x + 3.0, 0.0, 6.0) / 6.0


if __name__ == "__main__":
    key = jax.random.PRNGKey(0)
    # NCHW activation, consistent with the PyTorch module's conv-net usage.
    x = jax.random.normal(key, (2, 4, 16, 16), dtype=jnp.float32) * 4.0
    y = h_swish(x)
    jax.block_until_ready(y)
    assert y.shape == x.shape and y.dtype == x.dtype
    assert jnp.allclose(y, _h_swish_ref(x), atol=1e-6, rtol=1e-6), "mismatch vs reference"

    # Multi-block grid (even block count, partial last block).
    x2 = jax.random.normal(jax.random.PRNGKey(1), (2, 8, 56, 56), jnp.float32) * 4.0
    y2 = h_swish(x2)
    jax.block_until_ready(y2)
    assert jnp.allclose(y2, _h_swish_ref(x2), atol=1e-6, rtol=1e-6)

    # bf16 path: native bf16 compute on v6e/v7x, f32 compute on v5e.
    x3 = (jax.random.normal(jax.random.PRNGKey(2), (2, 8, 56, 56), jnp.float32) * 4.0
          ).astype(jnp.bfloat16)
    y3 = h_swish(x3)
    jax.block_until_ready(y3)
    assert y3.dtype == jnp.bfloat16 and y3.shape == x3.shape
    ref3 = _h_swish_ref(x3.astype(jnp.float32))
    assert jnp.allclose(y3.astype(jnp.float32), ref3, atol=0.2, rtol=0.05)

    # Ragged size with a non-empty prefix (kernel) + tail (jnp).
    x4 = jax.random.normal(jax.random.PRNGKey(3), (3, 5, 67), jnp.float32) * 4.0
    y4 = h_swish(x4)
    jax.block_until_ready(y4)
    assert y4.shape == x4.shape
    assert jnp.allclose(y4, _h_swish_ref(x4), atol=1e-6, rtol=1e-6)

    # Tiny ragged size (< 128 elements): pure-jnp tail path.
    x5 = jax.random.normal(jax.random.PRNGKey(4), (3, 5, 7), jnp.float32) * 4.0
    y5 = h_swish(x5)
    jax.block_until_ready(y5)
    assert y5.shape == x5.shape
    assert jnp.allclose(y5, _h_swish_ref(x5), atol=1e-6, rtol=1e-6)

    print("KERNEL_OK")
</pallas_src>

<mosaic_0001>
module attributes {stable_mosaic.version = 11 : i64} {
  func.func @kernel(%arg0: i32, %arg1: memref<2x1024xf32, #tpu.memory_space<vmem>>, %arg2: memref<2x1024xf32, #tpu.memory_space<vmem>>) attributes {dimension_semantics = [#tpu.dimension_semantics<parallel>], iteration_bounds = array<i64: 1>, scalar_prefetch = 0 : i64, scratch_operands = 0 : i64, tpu.core_type = #tpu.core_type<tc>, window_params = [{transform_indices = @transform_0, window_bounds = array<i64: 2, 1024>}, {transform_indices = @transform_1, window_bounds = array<i64: 2, 1024>}]} {
    %c0 = arith.constant 0 : index
    %c0_0 = arith.constant 0 : index
    %0 = vector.load %arg1[%c0, %c0_0] : memref<2x1024xf32, #tpu.memory_space<vmem>>, vector<2x1024xf32>
    %cst = arith.constant 3.000000e+00 : f32
    %1 = vector.broadcast %cst : f32 to vector<2x1024xf32>
    %2 = arith.addf %0, %1 : vector<2x1024xf32>
    %cst_1 = arith.constant 0.000000e+00 : f32
    %cst_2 = arith.constant 6.000000e+00 : f32
    %3 = vector.broadcast %cst_1 : f32 to vector<2x1024xf32>
    %4 = arith.maximumf %3, %2 : vector<2x1024xf32>
    %5 = vector.broadcast %cst_2 : f32 to vector<2x1024xf32>
    %6 = arith.minimumf %5, %4 : vector<2x1024xf32>
    %cst_3 = arith.constant 0.166666672 : f32
    %7 = vector.broadcast %cst_3 : f32 to vector<2x1024xf32>
    %8 = arith.mulf %6, %7 : vector<2x1024xf32>
    %9 = arith.mulf %0, %8 : vector<2x1024xf32>
    %c0_4 = arith.constant 0 : index
    %c0_5 = arith.constant 0 : index
    %10 = vector.load %arg2[%c0_4, %c0_5] : memref<2x1024xf32, #tpu.memory_space<vmem>>, vector<2x1024xf32>
    tpu.vector_store %arg2[%c0_4, %c0_5], %9 {strides = array<i32>} : memref<2x1024xf32, #tpu.memory_space<vmem>>, vector<2x1024xf32>,
    return
  }
  func.func @transform_0(%arg0: i32) -> (i32, i32) {
    %c0_i32 = arith.constant 0 : i32
    %c0_i32_0 = arith.constant 0 : i32
    return %arg0, %c0_i32 : i32, i32
  }
  func.func @transform_1(%arg0: i32) -> (i32, i32) {
    %c0_i32 = arith.constant 0 : i32
    %c0_i32_0 = arith.constant 0 : i32
    return %arg0, %c0_i32 : i32, i32
  }
}

</mosaic_0001>

<bundles_post_ra>
// kernel: tpu_custom_call.1
= control target key start
LH: loop header
LB: loop body
LE: loop exit
PB: predicated region body
PF: predicated region fallthrough
CT: control target
= control target key end

     0   :  { %6 = vsyncpa [#allocation3], 0  ;;  %s136_s0 = inlined_call_operand.hbm [shape: f32[2,1024], index: 0, kind: input, shape index: {}]   ;;  %s137_s1 = inlined_call_operand.hbm [shape: f32[2,1024], index: 1, kind: output, shape index: {}]  }
   0x1   :  { %7 = vsyncpa [#allocation4], 0  ;;  %s100_s6 = smov [#allocation2]   ;;  %s52_s10 = scalar_lea.hbm %s136_s0, 256 }
   0x2   :  { %s14_s7 = sshll.u32 %s100_s6, 4  ;;  %p53_p0 = scmp.ne.s32.totalorder %s136_s0, %s52_s10  ;;  %s15_s7 = int_to_ptr.vmem [resolvable:$true] %s14_s7 }
   0x3   :  { %p56_p1 = scmp.lt.u32.totalorder %s52_s10, %s136_s0 }
   0x5   :  { %p58_p2 = pnand %p56_p1, %p53_p0 }
   0x7   :  { %61 = shalt.err (!%p58_p2)
}
   0x8   :  { %s62_s15 = scalar_lea.vmem %s15_s7, 256  ;;  %p67_p4 = scmp.lt.s32.totalorder %s15_s7, %s15_s7 }
   0x9   :  { %p63_p3 = scmp.ne.s32.totalorder %s15_s7, %s62_s15  ;;  %p68_p5 = scmp.lt.s32.totalorder %s62_s15, %s62_s15 }
   0xb   :  { %p69_p6 = por %p68_p5, %p67_p4 }
   0xd   :  { %p70_p7 = pnand %p69_p6, %p63_p3 }
   0xf   :  { %73 = shalt.err (!%p70_p7)
}
  0x10   :  { %17 = dma.hbm_to_vmem [thread:$0]  %s136_s0, 256, %s15_s7, [#allocation3]  }
  0x11   :  { %96 = dma.done.wait [#allocation3], 256  }
  0x12   :  { %97 = vsyncadd [#allocation3], 4294967040  ;;  %v21_v0 = vld [vmem:[#allocation2] sm:$0xff]  ;;  %v22_v1 = vld [vmem:[#allocation2 + $0x8] sm:$0xff]  ;;  %s101_s18 = smov [#allocation5]  }
  0x13   :  { %v23_v2 = vadd.f32 3.0, %v21_v0  ;;  %v24_v3 = vadd.f32 3.0, %v22_v1  ;;  %s41_s19 = sshll.u32 %s101_s18, 4  ;;  %s42_s19 = int_to_ptr.vmem [resolvable:$true] %s41_s19 }
  0x14   :  { %s74_s0 = scalar_lea.vmem %s42_s19, 256  ;;  %p79_p9 = scmp.lt.s32.totalorder %s42_s19, %s42_s19 }
  0x15   :  { %v25_v4 = vmax.f32 %v23_v2, 0.0  ;;  %v26_v5 = vmax.f32 %v24_v3, 0.0  ;;  %p75_p8 = scmp.ne.s32.totalorder %s42_s19, %s74_s0  ;;  %p80_p10 = scmp.lt.s32.totalorder %s74_s0, %s74_s0 }
  0x17   :  { %v27_v6 = vmin.f32 %v25_v4, 6.0  ;;  %v28_v7 = vmin.f32 %v26_v5, 6.0  ;;  %p81_p11 = por %p80_p10, %p79_p9 }
  0x19   :  { %v29_v8 = vmul.f32 0.16666667, %v27_v6  ;;  %v30_v9 = vmul.f32 0.16666667, %v28_v7  ;;  %p82_p12 = pnand %p81_p11, %p75_p8 }
  0x1b   :  { %v31_v10 = vmul.f32 %v29_v8, %v21_v0  ;;  %v32_v11 = vmul.f32 %v30_v9, %v22_v1 }
  0x1d   :  { %33 = vst [vmem:[#allocation5] sm:$0xff] %v31_v10  ;;  %34 = vst [vmem:[#allocation5 + $0x8] sm:$0xff] %v32_v11 }
  0x1e   :  { %85 = shalt.err (!%p82_p12)
}
  0x1f   :  { %s86_s22 = scalar_lea.hbm %s137_s1, 256 }
  0x20   :  { %p87_p13 = scmp.ne.s32.totalorder %s137_s1, %s86_s22  ;;  %p90_p0 = scmp.lt.u32.totalorder %s86_s22, %s137_s1 }
  0x22   :  { %p92_p1 = pnand %p90_p0, %p87_p13 }
  0x24   :  { %95 = shalt.err (!%p92_p1)
}
  0x25   :  { %44 = dma.vmem_to_hbm [thread:$0]  %s42_s19, 256, %s137_s1, [#allocation4]  }
  0x26   :  { %98 = dma.done.wait [#allocation4], 256  }
  0x27   :  { %99 = vsyncadd [#allocation4], 4294967040 }
  0x28   :  { %48 = vsyncpa [#allocation3], 1 }
  0x29   :  { %49 = vsyncpa [#allocation4], 1 }

</bundles_post_ra>
